<compile_context>
chip_gen: v7x
topology: tpu7x:2x2x1
jax: 0.10.0
libtpu: 0.0.40
codegen_flags: <defaults>
</compile_context>

<pallas_src>
import functools
import math

import jax
import jax.numpy as jnp
from jax.experimental import pallas as pl
from jax.experimental.pallas import tpu as pltpu


def _vmem_capacity_bytes():
    """Physical VMEM per TensorCore; conservative fallback if the query fails."""
    try:
        return int(pltpu.get_tpu_info().vmem_capacity_bytes)
    except Exception:
        return 64 * 1024 * 1024  # v7x-safe


def _choose_tiles(B, S, E, vmem_limit_bytes):
    """Pick (block_b, block_s) from the VMEM budget.

    Budget is expressed in f32-equivalent elements per x block: the double-buffered
    input block plus ~2 block-sized f32 temporaries from the VPU mul/reduce path
    must fit under the scoped VMEM limit with headroom.
    """
    budget_elems = max(vmem_limit_bytes // 24, 8 * 8 * 128)
    row_elems = S * E

    if 8 * row_elems <= budget_elems or S <= 8:
        # Full-sequence blocks: grow the batch tile to fill the budget.
        st = S
        bt = max(8, (budget_elems // max(row_elems, 1)) // 8 * 8)
        if bt >= B:
            bt = B
            if B >= 16:  # keep both v7x TensorCores busy instead of a single step
                bt = (((B + 1) // 2) + 7) // 8 * 8
        else:
            nb = -(-B // bt)
            if nb % 2 == 1 and B >= 16:  # prefer an even step count per core
                cand = ((-(-B // (nb + 1))) + 7) // 8 * 8
                if cand >= 8 and (-(-B // cand)) % 2 == 0:
                    bt = cand
    else:
        # Long sequences: tile S too (online softmax in the kernel).
        bt = B if B < 8 else 8
        st = (budget_elems // max(bt * E, 1)) // 8 * 8
        if st >= S:
            st = S
        else:
            st = max(8, min(st, max(S // 8 * 8, 8)))
        # TODO(synk): if E alone is so large that an (8, 8, E) f32 block exceeds the
        # budget, an additional E-tiling pass (two-stage pooling) would be needed.
    return bt, st


def _attention_pooling_kernel(x_ref, w_ref, o_ref, m_ref, l_ref, acc_ref, *,
                              block_s, seq_len, mask_s):
    # x_ref: (Bt, St, E) native dtype | w_ref: (1, 1, E) f32 (pre-scaled by 1/sqrt(E))
    # o_ref: (Bt, E) | scratch: m (Bt,1), l (Bt,1), acc (Bt,E) all f32.
    sj = pl.program_id(1)

    @pl.when(sj == 0)
    def _init():
        m_ref[...] = jnp.full_like(m_ref, -jnp.inf)
        l_ref[...] = jnp.zeros_like(l_ref)
        acc_ref[...] = jnp.zeros_like(acc_ref)

    x = x_ref[...].astype(jnp.float32)            # exact f32 math (no-op for f32 inputs)
    w = w_ref[...]                                # (1, 1, E) f32, implicit broadcast

    if mask_s:  # ragged last S tile: kill garbage columns before they touch anything
        pos3 = sj * block_s + jax.lax.broadcasted_iota(jnp.int32, (1, block_s, 1), 1)
        x = jnp.where(pos3 < seq_len, x, 0.0)

    # Score projection: VPU multiply + cross-lane reduce over E (no M=1 MXU matmul).
    s = jnp.sum(x * w, axis=-1)                   # (Bt, St) f32, St lane-major

    if mask_s:
        pos2 = sj * block_s + jax.lax.broadcasted_iota(jnp.int32, (1, block_s), 1)
        s = jnp.where(pos2 < seq_len, s, -jnp.inf)

    # Online (streaming) softmax over the sequence axis.
    m_prev = m_ref[...]                                             # (Bt, 1)
    m_new = jnp.maximum(m_prev, jnp.max(s, axis=-1, keepdims=True))  # (Bt, 1)
    alpha = jnp.exp(m_prev - m_new)                                 # (Bt, 1)
    p = jnp.exp(s - m_new)                                          # (Bt, St)
    l_ref[...] = alpha * l_ref[...] + jnp.sum(p, axis=-1, keepdims=True)

    # Weighted token sum: VPU multiply + sublane reduce over St (no MXU).
    part = jnp.sum(p[:, :, None] * x, axis=1)                       # (Bt, E)
    acc_ref[...] = alpha * acc_ref[...] + part
    m_ref[...] = m_new

    @pl.when(sj == pl.num_programs(1) - 1)
    def _finalize():
        inv_l = pl.reciprocal(l_ref[...], approx=False)             # (Bt, 1)
        o_ref[...] = (acc_ref[...] * inv_l).astype(o_ref.dtype)


def attention_pooling(x, w, b=None, *, block_b=None, block_s=None):
    """x: (B, S, E); w: (1, E); b: (1,). Returns (B, E).

    The linear bias adds the same constant to every sequence position of a row, so
    it cancels exactly under the softmax over the sequence; it is not used in-kernel.
    """
    del b
    B, S, E = x.shape

    vmem_cap = _vmem_capacity_bytes()
    vmem_limit = (vmem_cap * 3) // 4              # ~96 MiB on v5e/v6e, ~48 MiB on v7x

    auto_bt, auto_st = _choose_tiles(B, S, E, vmem_limit)
    bt = auto_bt if block_b is None else block_b
    st = auto_st if block_s is None else block_s

    bt = min(bt, B)
    if bt < B:
        bt = max(8, bt // 8 * 8)                  # sublane-dense output tiles
    st = min(st, S)
    if st < S:
        st = max(8, st // 8 * 8)                  # (8,128) block constraint on S axis

    nb = pl.cdiv(B, bt)
    ns = pl.cdiv(S, st)
    mask_s = (S % st) != 0

    # Fold the 1/sqrt(E) scale into w on the host (tiny, once).
    w_scaled = (w.reshape(-1).astype(jnp.float32) * (1.0 / math.sqrt(E))).reshape(1, 1, E)

    kernel = functools.partial(_attention_pooling_kernel,
                               block_s=st, seq_len=S, mask_s=mask_s)

    return pl.pallas_call(
        kernel,
        out_shape=jax.ShapeDtypeStruct((B, E), x.dtype),
        grid_spec=pltpu.PrefetchScalarGridSpec(
            num_scalar_prefetch=0,
            grid=(nb, ns),
            in_specs=[
                pl.BlockSpec((bt, st, E), lambda i, j: (i, j, 0)),
                pl.BlockSpec((1, 1, E), lambda i, j: (0, 0, 0)),
            ],
            out_specs=pl.BlockSpec((bt, E), lambda i, j: (i, 0)),
            scratch_shapes=[
                pltpu.VMEM((bt, 1), jnp.float32),   # running max
                pltpu.VMEM((bt, 1), jnp.float32),   # running denominator
                pltpu.VMEM((bt, E), jnp.float32),   # running weighted sum
            ],
        ),
        compiler_params=pltpu.CompilerParams(
            dimension_semantics=("parallel", "arbitrary"),
            vmem_limit_bytes=vmem_limit,
        ),
    )(x, w_scaled)


def attention_pooling_ref(x, w, b):
    """Pure-JAX reference mirroring the PyTorch forward."""
    E = x.shape[-1]
    scores = (jnp.einsum("bse,oe->bso", x, w,
                         precision=jax.lax.Precision.HIGHEST) + b) / math.sqrt(E)
    weights = jax.nn.softmax(scores, axis=1)
    return jnp.sum(weights * x, axis=1)


if __name__ == "__main__":
    key = jax.random.PRNGKey(0)
    kx, kw, kb = jax.random.split(key, 3)

    B, S, E = 2, 8, 32
    x = jax.random.normal(kx, (B, S, E), dtype=jnp.float32)
    bound = 1.0 / math.sqrt(E)   # nn.Linear(E, 1) default init bounds
    w = jax.random.uniform(kw, (1, E), jnp.float32, minval=-bound, maxval=bound)
    b = jax.random.uniform(kb, (1,), jnp.float32, minval=-bound, maxval=bound)

    out = jax.block_until_ready(attention_pooling(x, w, b))
    ref = attention_pooling_ref(x, w, b)
    assert out.shape == (B, E)
    assert jnp.allclose(out, ref, atol=1e-5, rtol=1e-5), "mismatch vs reference (B=2)"

    # Partial last batch block + multi-step batch grid (no jnp.pad of x).
    B2 = 20
    x2 = jax.random.normal(jax.random.PRNGKey(1), (B2, S, E), dtype=jnp.float32)
    out2 = jax.block_until_ready(attention_pooling(x2, w, b))
    ref2 = attention_pooling_ref(x2, w, b)
    assert out2.shape == (B2, E)
    assert jnp.allclose(out2, ref2, atol=1e-5, rtol=1e-5), "mismatch vs reference (B=20)"

    # Long-sequence path: force S-tiling with a ragged last S tile
    # (online softmax + mask), which is the v7x long-S failure mode.
    B3, S3 = 4, 20
    x3 = jax.random.normal(jax.random.PRNGKey(2), (B3, S3, E), dtype=jnp.float32)
    out3 = jax.block_until_ready(attention_pooling(x3, w, b, block_s=8))
    ref3 = attention_pooling_ref(x3, w, b)
    assert out3.shape == (B3, E)
    assert jnp.allclose(out3, ref3, atol=1e-5, rtol=1e-5), "mismatch vs reference (S-tiled)"

    print("KERNEL_OK")
</pallas_src>

<mosaic_0001>
module attributes {stable_mosaic.version = 11 : i64} {
  func.func @_attention_pooling_kernel(%arg0: i32, %arg1: i32, %arg2: memref<2x8x32xf32, #tpu.memory_space<vmem>>, %arg3: memref<1x1x32xf32, #tpu.memory_space<vmem>>, %arg4: memref<2x32xf32, #tpu.memory_space<vmem>>, %arg5: memref<2x1xf32, #tpu.memory_space<vmem>>, %arg6: memref<2x1xf32, #tpu.memory_space<vmem>>, %arg7: memref<2x32xf32, #tpu.memory_space<vmem>>) attributes {dimension_semantics = [#tpu.dimension_semantics<parallel>, #tpu.dimension_semantics<arbitrary>], iteration_bounds = array<i64: 1, 1>, scalar_prefetch = 0 : i64, scratch_operands = 3 : i64, tpu.core_type = #tpu.core_type<tc>, window_params = [{transform_indices = @transform_0, window_bounds = array<i64: 2, 8, 32>}, {pipeline_mode = #tpu.pipeline_mode<synchronous>, transform_indices = @transform_1, window_bounds = array<i64: 1, 1, 32>}, {transform_indices = @transform_2, window_bounds = array<i64: 2, 32>}]} {
    %c0_i32 = arith.constant 0 : i32
    %0 = arith.cmpi eq, %arg1, %c0_i32 : i32
    %1 = arith.extui %0 : i1 to i32
    %c0_i32_0 = arith.constant 0 : i32
    %2 = arith.cmpi ne, %1, %c0_i32_0 : i32
    scf.if %2 {
      %cst_23 = arith.constant 0xFF800000 : f32
      %36 = vector.broadcast %cst_23 : f32 to vector<2x1xf32>
      %c0_24 = arith.constant 0 : index
      %c0_25 = arith.constant 0 : index
      %37 = vector.load %arg5[%c0_24, %c0_25] : memref<2x1xf32, #tpu.memory_space<vmem>>, vector<2x1xf32>
      tpu.vector_store %arg5[%c0_24, %c0_25], %36 {strides = array<i32>} : memref<2x1xf32, #tpu.memory_space<vmem>>, vector<2x1xf32>,
      %cst_26 = arith.constant 0.000000e+00 : f32
      %38 = vector.broadcast %cst_26 : f32 to vector<2x1xf32>
      %c0_27 = arith.constant 0 : index
      %c0_28 = arith.constant 0 : index
      %39 = vector.load %arg6[%c0_27, %c0_28] : memref<2x1xf32, #tpu.memory_space<vmem>>, vector<2x1xf32>
      tpu.vector_store %arg6[%c0_27, %c0_28], %38 {strides = array<i32>} : memref<2x1xf32, #tpu.memory_space<vmem>>, vector<2x1xf32>,
      %cst_29 = arith.constant 0.000000e+00 : f32
      %40 = vector.broadcast %cst_29 : f32 to vector<2x32xf32>
      %c0_30 = arith.constant 0 : index
      %c0_31 = arith.constant 0 : index
      %41 = vector.load %arg7[%c0_30, %c0_31] : memref<2x32xf32, #tpu.memory_space<vmem>>, vector<2x32xf32>
      tpu.vector_store %arg7[%c0_30, %c0_31], %40 {strides = array<i32>} : memref<2x32xf32, #tpu.memory_space<vmem>>, vector<2x32xf32>,
    } else {
    }
    %c0 = arith.constant 0 : index
    %c0_1 = arith.constant 0 : index
    %c0_2 = arith.constant 0 : index
    %3 = vector.load %arg2[%c0, %c0_1, %c0_2] : memref<2x8x32xf32, #tpu.memory_space<vmem>>, vector<2x8x32xf32>
    %c0_3 = arith.constant 0 : index
    %c0_4 = arith.constant 0 : index
    %c0_5 = arith.constant 0 : index
    %4 = vector.load %arg3[%c0_3, %c0_4, %c0_5] : memref<1x1x32xf32, #tpu.memory_space<vmem>>, vector<1x1x32xf32>
    %5 = vector.broadcast %4 : vector<1x1x32xf32> to vector<2x8x32xf32>
    %6 = arith.mulf %3, %5 : vector<2x8x32xf32>
    %cst = arith.constant dense<0.000000e+00> : vector<2x8xf32>
    %7 = vector.multi_reduction <add>, %6, %cst [2] : vector<2x8x32xf32> to vector<2x8xf32>
    %c0_6 = arith.constant 0 : index
    %c0_7 = arith.constant 0 : index
    %8 = vector.load %arg5[%c0_6, %c0_7] : memref<2x1xf32, #tpu.memory_space<vmem>>, vector<2x1xf32>
    %cst_8 = arith.constant dense<0xFF800000> : vector<2xf32>
    %9 = vector.multi_reduction <maximumf>, %7, %cst_8 [1] : vector<2x8xf32> to vector<2xf32>
    %10 = vector.shape_cast %9 : vector<2xf32> to vector<2x1xf32>
    %11 = arith.maximumf %8, %10 : vector<2x1xf32>
    %12 = arith.subf %8, %11 : vector<2x1xf32>
    %13 = math.exp %12 : vector<2x1xf32>
    %14 = vector.broadcast %11 : vector<2x1xf32> to vector<2x8xf32>
    %15 = arith.subf %7, %14 : vector<2x8xf32>
    %16 = math.exp %15 : vector<2x8xf32>
    %c0_9 = arith.constant 0 : index
    %c0_10 = arith.constant 0 : index
    %17 = vector.load %arg6[%c0_9, %c0_10] : memref<2x1xf32, #tpu.memory_space<vmem>>, vector<2x1xf32>
    %18 = arith.mulf %13, %17 : vector<2x1xf32>
    %cst_11 = arith.constant dense<0.000000e+00> : vector<2xf32>
    %19 = vector.multi_reduction <add>, %16, %cst_11 [1] : vector<2x8xf32> to vector<2xf32>
    %20 = vector.shape_cast %19 : vector<2xf32> to vector<2x1xf32>
    %21 = arith.addf %18, %20 : vector<2x1xf32>
    %c0_12 = arith.constant 0 : index
    %c0_13 = arith.constant 0 : index
    %22 = vector.load %arg6[%c0_12, %c0_13] : memref<2x1xf32, #tpu.memory_space<vmem>>, vector<2x1xf32>
    tpu.vector_store %arg6[%c0_12, %c0_13], %21 {strides = array<i32>} : memref<2x1xf32, #tpu.memory_space<vmem>>, vector<2x1xf32>,
    %23 = vector.shape_cast %16 : vector<2x8xf32> to vector<2x8x1xf32>
    %24 = vector.broadcast %23 : vector<2x8x1xf32> to vector<2x8x32xf32>
    %25 = arith.mulf %24, %3 : vector<2x8x32xf32>
    %cst_14 = arith.constant dense<0.000000e+00> : vector<2x32xf32>
    %26 = vector.multi_reduction <add>, %25, %cst_14 [1] : vector<2x8x32xf32> to vector<2x32xf32>
    %c0_15 = arith.constant 0 : index
    %c0_16 = arith.constant 0 : index
    %27 = vector.load %arg7[%c0_15, %c0_16] : memref<2x32xf32, #tpu.memory_space<vmem>>, vector<2x32xf32>
    %28 = vector.broadcast %13 : vector<2x1xf32> to vector<2x32xf32>
    %29 = arith.mulf %28, %27 : vector<2x32xf32>
    %30 = arith.addf %29, %26 : vector<2x32xf32>
    %c0_17 = arith.constant 0 : index
    %c0_18 = arith.constant 0 : index
    %31 = vector.load %arg7[%c0_17, %c0_18] : memref<2x32xf32, #tpu.memory_space<vmem>>, vector<2x32xf32>
    tpu.vector_store %arg7[%c0_17, %c0_18], %30 {strides = array<i32>} : memref<2x32xf32, #tpu.memory_space<vmem>>, vector<2x32xf32>,
    %c0_19 = arith.constant 0 : index
    %c0_20 = arith.constant 0 : index
    %32 = vector.load %arg5[%c0_19, %c0_20] : memref<2x1xf32, #tpu.memory_space<vmem>>, vector<2x1xf32>
    tpu.vector_store %arg5[%c0_19, %c0_20], %11 {strides = array<i32>} : memref<2x1xf32, #tpu.memory_space<vmem>>, vector<2x1xf32>,
    %c0_i32_21 = arith.constant 0 : i32
    %33 = arith.cmpi eq, %arg1, %c0_i32_21 : i32
    %34 = arith.extui %33 : i1 to i32
    %c0_i32_22 = arith.constant 0 : i32
    %35 = arith.cmpi ne, %34, %c0_i32_22 : i32
    scf.if %35 {
      %c0_23 = arith.constant 0 : index
      %c0_24 = arith.constant 0 : index
      %36 = vector.load %arg6[%c0_23, %c0_24] : memref<2x1xf32, #tpu.memory_space<vmem>>, vector<2x1xf32>
      %37 = tpu.reciprocal %36 : vector<2x1xf32> -> vector<2x1xf32>
      %c0_25 = arith.constant 0 : index
      %c0_26 = arith.constant 0 : index
      %38 = vector.load %arg7[%c0_25, %c0_26] : memref<2x32xf32, #tpu.memory_space<vmem>>, vector<2x32xf32>
      %39 = vector.broadcast %37 : vector<2x1xf32> to vector<2x32xf32>
      %40 = arith.mulf %38, %39 : vector<2x32xf32>
      %c0_27 = arith.constant 0 : index
      %c0_28 = arith.constant 0 : index
      %41 = vector.load %arg4[%c0_27, %c0_28] : memref<2x32xf32, #tpu.memory_space<vmem>>, vector<2x32xf32>
      tpu.vector_store %arg4[%c0_27, %c0_28], %40 {strides = array<i32>} : memref<2x32xf32, #tpu.memory_space<vmem>>, vector<2x32xf32>,
    } else {
    }
    return
  }
  func.func @transform_0(%arg0: i32, %arg1: i32) -> (i32, i32, i32) {
    %c0_i32 = arith.constant 0 : i32
    %c0_i32_0 = arith.constant 0 : i32
    return %arg0, %arg1, %c0_i32 : i32, i32, i32
  }
  func.func @transform_1(%arg0: i32, %arg1: i32) -> (i32, i32, i32) {
    %c0_i32 = arith.constant 0 : i32
    %c0_i32_0 = arith.constant 0 : i32
    %c0_i32_1 = arith.constant 0 : i32
    %c0_i32_2 = arith.constant 0 : i32
    return %c0_i32, %c0_i32_0, %c0_i32_1 : i32, i32, i32
  }
  func.func @transform_2(%arg0: i32, %arg1: i32) -> (i32, i32) {
    %c0_i32 = arith.constant 0 : i32
    %c0_i32_0 = arith.constant 0 : i32
    return %arg0, %c0_i32 : i32, i32
  }
}

</mosaic_0001>

<bundles_post_ra>
// kernel: tpu_custom_call.1
= control target key start
LH: loop header
LB: loop body
LE: loop exit
PB: predicated region body
PF: predicated region fallthrough
CT: control target
= control target key end

     0   :  { %7 = vsyncpa [#allocation6], 0  ;;  %s315_s0 = inlined_call_operand.hbm [shape: f32[2,8,32], index: 0, kind: input, shape index: {}]   ;;  %s316_s1 = inlined_call_operand.vmem [shape: f32[1,1,32], index: 1, kind: input, shape index: {}]   ;;  %s317_s2 = inlined_call_operand.hbm [shape: f32[2,32], index: 2, kind: output, shape index: {}]  }
   0x1   :  { %8 = vsyncpa [#allocation7], 0  ;;  %s250_s9 = smov [#allocation5]   ;;  %s202_s13 = scalar_lea.hbm %s315_s0, 256 }
   0x2   :  { %s14_s10 = sshll.u32 %s250_s9, 4  ;;  %p203_p0 = scmp.ne.s32.totalorder %s315_s0, %s202_s13  ;;  %s15_s10 = int_to_ptr.vmem [resolvable:$true] %s14_s10 }
   0x3   :  { %p206_p1 = scmp.lt.u32.totalorder %s202_s13, %s315_s0 }
   0x5   :  { %p208_p2 = pnand %p206_p1, %p203_p0 }
   0x7   :  { %211 = shalt.err (!%p208_p2)
}
   0x8   :  { %s212_s18 = scalar_lea.vmem %s15_s10, 256  ;;  %p217_p4 = scmp.lt.s32.totalorder %s15_s10, %s15_s10 }
   0x9   :  { %p213_p3 = scmp.ne.s32.totalorder %s15_s10, %s212_s18  ;;  %p218_p5 = scmp.lt.s32.totalorder %s212_s18, %s212_s18 }
   0xb   :  { %p219_p6 = por %p218_p5, %p217_p4 }
   0xd   :  { %p220_p7 = pnand %p219_p6, %p213_p3 }
   0xf   :  { %223 = shalt.err (!%p220_p7)
}
  0x10   :  { %s251_s19 = smov 128   ;;  %s252_s20 = smov 8  }
  0x11   :  { %20 = dma.hbm_to_vmem [thread:$0]  %s315_s0, 256, %s15_s10, [#allocation6], %s251_s19, %s251_s19, %s252_s20  }
  0x12   :  { %246 = dma.done.wait [#allocation6], 256  }
  0x13   :  { %247 = vsyncadd [#allocation6], 4294967040  ;;  %v35_v0 = vld [vmem:[#allocation5] sm:$0xff]  ;;  %v184_v1 = vld [vmem:[%s316_s1] ss:$0 sm:$0xff]  ;;  %vm46_vm0 = vcmask 261120   ;;  %v56_v8 = vlaneseq }
  0x14   :  { %v36_v2 = vld [vmem:[#allocation5 + $0x8] sm:$0xff]  ;;  %v44_v3 = vmul.f32 %v184_v1, %v35_v0  ;;  %vm30_vm1 = vcmask 1024   ;;  %v253_v7 = vmov -inf   ;;  %vm66_vm2 = vcmask 1041409   ;;  %s256_s0 = smov [#allocation8]  }
  0x15   :  { %v45_v4 = vmul.f32 %v184_v1, %v36_v2  ;;  %31 = vst.msk [vmem:[#allocation2] sm:$0x3] %vm30_vm1, %v253_v7  ;;  %v57_v9 = vand.u32 127, %v56_v8  ;;  %v59_v10 = vshrl.u32 %v56_v8, 7  ;;  %vm69_vm3 = vcmask 58368   ;;  %s175_s1 = sshll.u32 %s256_s0, 4  ;;  %s176_s1 = int_to_ptr.vmem [resolvable:$true] %s175_s1 }
  0x16   :  { %v47_v5 = vsel %vm46_vm0, %v44_v3, 0.0  ;;  %v254_v18 = vmov 0   ;;  %v255_v19 = vmov 0.0   ;;  %vm33_vm4 = vcmask 254976   ;;  %s224_s25 = scalar_lea.vmem %s176_s1, 32  ;;  %p229_p9 = scmp.lt.s32.totalorder %s176_s1, %s176_s1 }
  0x17   :  { %48 = vadd.xlane.f32.xlu0 %v47_v5  ;;  %v50_v6 = vsel %vm46_vm0, %v45_v4, 0.0  ;;  %v60_v12 = vsub.s32 %v57_v9, %v59_v10  ;;  %192 = vset.pattern.permute.xlu1 %v254_v18  ;;  %32 = vst.msk [vmem:[#allocation3] sm:$0x3] %vm30_vm1, %v255_v19  ;;  %v83_v24 = vsub.s32 0, %v59_v10  ;;  %v87_v25 = vsub.s32 1, %v59_v10  ;;  %p225_p8 = scmp.ne.s32.totalorder %s176_s1, %s224_s25  ;;  %p230_p10 = scmp.lt.s32.totalorder %s224_s25, %s224_s25 }
  0x18   :  { %193 = vset.pattern.permute.xlu0 %v254_v18  ;;  %34 = vst.msk [vmem:[#allocation4] sm:$0x3] %vm33_vm4, %v255_v19 }
  0x19   :  { %p231_p11 = por %p230_p10, %p229_p9 }
  0x1b   :  { %51 = vadd.xlane.f32.xlu0 %v50_v6  ;;  %p232_p12 = pnand %p231_p11, %p225_p8 }
  0x1c   :  { %v53_v20 = vld [vmem:[#allocation2] sm:$0x3] }
  0x1f   :  { %v141_v57 = vld [vmem:[#allocation4] sm:$0x3] }
  0xa4   :  { %v49_v11 = vpop.xlane.xlu0 %48 }
  0xa5   :  { %v61_v14 = vrot.slane %v49_v11, %v60_v12 }
  0xa8   :  { %v52_v13 = vpop.xlane.xlu0 %51 }
  0xa9   :  { %v65_v15 = vrot.slane %v52_v13, %v60_v12 }
  0xab   :  { %v67_v16 = vsel %vm66_vm2, %v65_v15, %v61_v14 }
  0xac   :  { %v70_v17 = vsel %vm69_vm3, %v67_v16, -inf }
  0xad   :  { %71 = vmax.xlane.f32.xlu1 %v70_v17 }
 0x13a   :  { %v72_v21 = vpop.xlane.xlu1 %71 }
 0x13b   :  { %v73_v22 = vmax.f32 %v53_v20, %v72_v21 }
 0x13d   :  { %v74_v23 = vsub.f32 %v53_v20, %v73_v22  ;;  %155 = vst.msk [vmem:[#allocation2] sm:$0x3] %vm30_vm1, %v73_v22  ;;  %79 = vperm.xlu1 %192, %v73_v22  }
 0x13f   :  { %v75_v33 = vmul.f32 1.442695, %v74_v23 }
 0x1bc   :  { %v80_v26 = vpop.permute.xlu1 %79 }
 0x1bd   :  { %v84_v27 = vrot.slane %v80_v26, %v83_v24  ;;  %v88_v28 = vrot.slane %v80_v26, %v87_v25 }
 0x1bf   :  { %v91_v29 = vsub.f32 %v49_v11, %v84_v27  ;;  %v92_v30 = vsub.f32 %v52_v13, %v88_v28 }
 0x1c1   :  { %v93_v31 = vmul.f32 1.442695, %v91_v29  ;;  %v95_v32 = vmul.f32 1.442695, %v92_v30 }
 0x1c3   :  { %194 = vpow2.f32 %v93_v31 }
 0x1c4   :  { %196 = vpow2.f32 %v95_v32 }
 0x1c5   :  { %198 = vpow2.f32 %v75_v33 }
 0x1cd   :  { %v195_v34 = vpop.eup %194 }
 0x1ce   :  { %v197_v35 = vpop.eup %196  ;;  %102 = vperm.xlu0 %193, %v195_v34  }
 0x1cf   :  { %105 = vperm.xlu1 %192, %v197_v35   ;;  %v199_v36 = vpop.eup %198 }
 0x1d2   :  { %144 = vperm.xlu0 %193, %v199_v36  }
 0x24d   :  { %v103_v37 = vpop.permute.xlu0 %102 }
 0x24e   :  { %v106_v38 = vpop.permute.xlu1 %105  ;;  %v110_v39 = vrot.slane %v103_v37, %v60_v12  ;;  %v125_v40 = vmul.f32 %v103_v37, %v35_v0  ;;  %v97_v0 = vld [vmem:[#allocation3] sm:$0x3] }
 0x24f   :  { %v114_v41 = vrot.slane %v106_v38, %v60_v12  ;;  %v126_v42 = vmul.f32 %v106_v38, %v36_v2  ;;  %v98_v1 = vmul.f32 %v199_v36, %v97_v0 }
 0x250   :  { %v127_v43 = vsel %vm46_vm0, %v125_v40, 0.0 }
 0x251   :  { %v134_v44 = vsel %vm46_vm0, %v126_v42, 0.0  ;;  %v128_v45 = vrot.slane %v127_v43, 4  ;;  %v115_v46 = vsel %vm66_vm2, %v114_v41, %v110_v39  ;;  %v145_v58 = vpop.permute.xlu0 %144 }
 0x252   :  { %v135_v47 = vrot.slane %v134_v44, 4  ;;  %v117_v48 = vsel %vm69_vm3, %v115_v46, 0.0  ;;  %v147_v61 = vmul.f32 %v145_v58, %v141_v57 }
 0x253   :  { %v129_v49 = vadd.f32 %v128_v45, %v127_v43  ;;  %118 = vadd.xlane.f32.xlu1 %v117_v48 }
 0x254   :  { %v136_v50 = vadd.f32 %v135_v47, %v134_v44 }
 0x255   :  { %v130_v51 = vrot.slane %v129_v49, 2 }
 0x256   :  { %v137_v52 = vrot.slane %v136_v50, 2 }
 0x257   :  { %v131_v53 = vadd.f32 %v130_v51, %v129_v49 }
 0x258   :  { %v138_v54 = vadd.f32 %v137_v52, %v136_v50 }
 0x259   :  { %v132_v55 = vrot.slane %v131_v53, 1 }
 0x25a   :  { %v139_v56 = vrot.slane %v138_v54, 1 }
 0x25b   :  { %v133_v59 = vadd.f32 %v132_v55, %v131_v53 }
 0x25c   :  { %v140_v60 = vadd.f32 %v139_v56, %v138_v54 }
 0x25e   :  { %v150_v62 = vsel %vm66_vm2, %v140_v60, %v133_v59 }
 0x25f   :  { %v152_v63 = vadd.f32 %v150_v62, %v147_v61 }
 0x261   :  { %154 = vst.msk [vmem:[#allocation4] sm:$0x3] %vm33_vm4, %v152_v63 }
 0x268   :  { %v161_v6 = vld [vmem:[#allocation4] sm:$0x3] }
 0x2e0   :  { %v119_v2 = vpop.xlane.xlu1 %118 }
 0x2e1   :  { %v120_v3 = vadd.f32 %v119_v2, %v98_v1 }
 0x2e3   :  { %122 = vst.msk [vmem:[#allocation3] sm:$0x3] %vm30_vm1, %v120_v3 }
 0x2ea   :  { %v159_v4 = vld [vmem:[#allocation3] sm:$0x3] }
 0x2eb   :  { %200 = vrcp.f32 %v159_v4 }
 0x2f5   :  { %v201_v5 = vpop.eup %200 }
 0x2f6   :  { %164 = vperm.xlu0 %193, %v201_v5  }
 0x375   :  { %v165_v7 = vpop.permute.xlu0 %164 }
 0x376   :  { %v167_v8 = vmul.f32 %v165_v7, %v161_v6 }
 0x378   :  { %168 = vst.msk [vmem:[#allocation8] sm:$0x3] %vm33_vm4, %v167_v8 }
 0x379   :  { %235 = shalt.err (!%p232_p12)
}
 0x37a   :  { %s236_s28 = scalar_lea.hbm %s317_s2, 32 }
 0x37b   :  { %p237_p13 = scmp.ne.s32.totalorder %s317_s2, %s236_s28  ;;  %p240_p0 = scmp.lt.u32.totalorder %s236_s28, %s317_s2 }
 0x37d   :  { %p242_p1 = pnand %p240_p0, %p237_p13 }
 0x37f   :  { %245 = shalt.err (!%p242_p1)
}
 0x380   :  { %178 = dma.vmem_to_hbm [thread:$0]  %s176_s1, 32, %s317_s2, [#allocation7]  }
 0x381   :  { %248 = dma.done.wait [#allocation7], 32  }
 0x382   :  { %249 = vsyncadd [#allocation7], 4294967264 }
 0x383   :  { %182 = vsyncpa [#allocation6], 1 }
 0x384   :  { %183 = vsyncpa [#allocation7], 1 }

</bundles_post_ra>
